<compile_context>
chip_gen: v7x
topology: tpu7x:2x2x1
jax: 0.10.0
libtpu: 0.0.40
codegen_flags: <defaults>
</compile_context>

<pallas_src>
import functools
import math

import jax
import jax.numpy as jnp
from jax.experimental import pallas as pl
from jax.experimental.pallas import tpu as pltpu

_LANE = 128
_SUBLANE = 8
# Per-input block budget measured in *f32* bytes (the in-kernel diff/square
# intermediates are f32 regardless of the input dtype): 1 MiB => 2048 rows.
_F32_BLOCK_BYTES = 1 << 20


def _sublane_multiple(dtype) -> int:
    """Native second-minor tile multiple for the given dtype."""
    return {1: 32, 2: 16}.get(jnp.dtype(dtype).itemsize, 8)


def _psnr_sse_kernel(out_ref, lab_ref, sse_ref, acc_ref, *,
                     rows_per_block, n_k, valid_rows, needs_mask):
    """grid = (B, n_splits, n_k).  Emits per-(sample, split) sum of squared errors."""
    s = pl.program_id(1)
    k = pl.program_id(2)

    @pl.when(k == 0)
    def _():
        acc_ref[...] = jnp.zeros_like(acc_ref)

    # Cast on the streamed block: inputs keep their native dtype in HBM/VMEM.
    diff = out_ref[...].astype(jnp.float32) - lab_ref[...].astype(jnp.float32)
    sq = diff * diff
    if needs_mask:
        # Intended (unclamped) global row ids for this block; rows at/after
        # `valid_rows` are out-of-bounds / duplicate data and must not count.
        base = (s * n_k + k) * rows_per_block
        row_ids = base + jax.lax.broadcasted_iota(
            jnp.int32, (rows_per_block, _LANE), 0)
        sq = jnp.where(row_ids < valid_rows, sq, jnp.float32(0.0))
    # Fold the block into a single (8, 128) tile with pure VPU vreg adds
    # (tile-aligned reshape, no cross-lane work in the hot loop).
    acc_ref[...] += jnp.sum(
        sq.reshape(rows_per_block // _SUBLANE, _SUBLANE, _LANE), axis=0)

    @pl.when(k == pl.num_programs(2) - 1)
    def _():
        # Epilogue: sublane-sum first (cheap), then one cross-lane reduce.
        col = jnp.sum(acc_ref[...], axis=0, keepdims=True)     # (1, 128)
        sse_ref[...] = jnp.sum(col, axis=1, keepdims=True)     # (1, 1)


def psnr_pallas(toutputs, tlabels):
    """Per-sample PSNR. toutputs/tlabels: NCHW (any dtype), same shape.

    Returns a float32 array of shape (B,).
    """
    assert toutputs.shape == tlabels.shape
    B = toutputs.shape[0]
    n_elems = int(math.prod(toutputs.shape[1:]))
    assert n_elems > 0

    sub_mult = _sublane_multiple(toutputs.dtype)
    rows_budget = _F32_BLOCK_BYTES // (_LANE * 4)          # 2048 (mult of 32)

    # Rows of a (R, 128) lane-aligned view of each flattened sample.
    R = -(-n_elems // _LANE)
    if R <= rows_budget:
        # Small sample: pad rows up to the dtype's native sublane multiple so
        # a single full-dim block covers the sample (cheap pad, zeros only).
        R_pad = -(-R // sub_mult) * sub_mult
    else:
        # Large sample: stream fixed blocks and mask the tail block instead
        # of copying/padding the whole image.
        R_pad = R
    rows_per_block = min(rows_budget, R_pad)

    flat_o = toutputs.reshape(B, n_elems)
    flat_l = tlabels.reshape(B, n_elems)
    pad = R_pad * _LANE - n_elems
    if pad:
        # Zero-padding both inputs => zero diff => zero SSE contribution.
        flat_o = jnp.pad(flat_o, ((0, 0), (0, pad)))
        flat_l = jnp.pad(flat_l, ((0, 0), (0, pad)))
    out3 = flat_o.reshape(B, R_pad, _LANE)
    lab3 = flat_l.reshape(B, R_pad, _LANE)

    n_blocks = -(-R_pad // rows_per_block)
    # For the B == 1 (.item()) path, split the per-sample reduction in two so
    # both v7x TensorCores stream HBM; harmless (serial) on v5e/v6e.
    n_splits = 2 if (B == 1 and n_blocks >= 2) else 1
    n_k = -(-n_blocks // n_splits)
    needs_mask = (n_splits * n_k * rows_per_block != R_pad)
    last_block = n_blocks - 1

    kernel = functools.partial(
        _psnr_sse_kernel,
        rows_per_block=rows_per_block, n_k=n_k,
        valid_rows=R_pad, needs_mask=needs_mask)

    def in_map(b, s, k):
        # Clamp so the DMA never targets a fully out-of-range block; the
        # kernel masks by the *unclamped* row ids, so duplicates contribute 0.
        return (b, jnp.minimum(s * n_k + k, last_block), 0)

    sse_parts = pl.pallas_call(
        kernel,
        out_shape=jax.ShapeDtypeStruct((B, n_splits, 1, 1), jnp.float32),
        grid_spec=pltpu.PrefetchScalarGridSpec(
            num_scalar_prefetch=0,
            grid=(B, n_splits, n_k),
            in_specs=[
                pl.BlockSpec((None, rows_per_block, _LANE), in_map),
                pl.BlockSpec((None, rows_per_block, _LANE), in_map),
            ],
            out_specs=pl.BlockSpec((None, None, 1, 1),
                                   lambda b, s, k: (b, s, 0, 0)),
            scratch_shapes=[pltpu.VMEM((_SUBLANE, _LANE), jnp.float32)],
        ),
        compiler_params=pltpu.CompilerParams(
            dimension_semantics=("parallel", "parallel", "arbitrary"),
            vmem_limit_bytes=32 * 1024 * 1024,
        ),
    )(out3, lab3)

    # Tiny per-sample scalar epilogue (combine the split partial SSEs).
    sse = jnp.sum(sse_parts.reshape(B, n_splits), axis=1)        # (B,)
    data_range_sq = jnp.float32(255.0 * 255.0)
    mse = (sse / jnp.float32(n_elems)) * data_range_sq
    return jnp.float32(10.0) * jnp.log10(data_range_sq / mse)    # (B,)


def psnr_metric_forward(toutputs, tlabels):
    """Faithful port of PSNRMetric.forward (returns a Python float via .item())."""
    psnr = psnr_pallas(toutputs, tlabels)
    # torch .item() requires exactly one element.
    assert psnr.shape[0] == 1, ".item() semantics require batch_size == 1"
    return float(psnr[0])


if __name__ == "__main__":
    key = jax.random.PRNGKey(0)
    ks = jax.random.split(key, 8)

    def ref_psnr(a, b):
        a = a.astype(jnp.float32)
        b = b.astype(jnp.float32)
        mse = jnp.mean((a - b) ** 2, axis=(1, 2, 3)) * 255.0 ** 2
        return 10.0 * jnp.log10(255.0 ** 2 / mse)

    # Case 1: small aligned f32 sample (B=2, C=4, 16x16) -> single-block path.
    to1 = jax.random.uniform(ks[0], (2, 4, 16, 16), jnp.float32, 0.0, 255.0)
    tl1 = jax.random.uniform(ks[1], (2, 4, 16, 16), jnp.float32, 0.0, 255.0)
    p1 = psnr_pallas(to1, tl1)
    jax.block_until_ready(p1)
    r1 = ref_psnr(to1, tl1)
    assert jnp.allclose(p1, r1, atol=1e-3, rtol=1e-4), (p1, r1)

    # Case 2: odd sample size (105 elems) -> zero-padded single-block path.
    to2 = jax.random.uniform(ks[2], (2, 3, 5, 7), jnp.float32, 0.0, 255.0)
    tl2 = jax.random.uniform(ks[3], (2, 3, 5, 7), jnp.float32, 0.0, 255.0)
    p2 = psnr_pallas(to2, tl2)
    jax.block_until_ready(p2)
    r2 = ref_psnr(to2, tl2)
    assert jnp.allclose(p2, r2, atol=1e-3, rtol=1e-4), (p2, r2)

    # Case 3: uint8 images (packed dtype) -> 32-row-multiple single block.
    to3 = jax.random.randint(ks[4], (2, 3, 32, 32), 0, 256, jnp.int32).astype(jnp.uint8)
    tl3 = jax.random.randint(ks[5], (2, 3, 32, 32), 0, 256, jnp.int32).astype(jnp.uint8)
    p3 = psnr_pallas(to3, tl3)
    jax.block_until_ready(p3)
    r3 = ref_psnr(to3, tl3)
    assert jnp.allclose(p3, r3, atol=1e-3, rtol=1e-4), (p3, r3)

    # Case 4: B == 1, multi-block -> streamed blocks, 2-way split + masked tail.
    to4 = jax.random.uniform(ks[6], (1, 1, 640, 512), jnp.float32, 0.0, 255.0)
    tl4 = jax.random.uniform(ks[7], (1, 1, 640, 512), jnp.float32, 0.0, 255.0)
    p4 = psnr_pallas(to4, tl4)
    jax.block_until_ready(p4)
    r4 = ref_psnr(to4, tl4)
    assert jnp.allclose(p4, r4, atol=1e-3, rtol=1e-4), (p4, r4)

    # Case 5: .item() semantics (batch == 1), exactly like the torch module.
    val = psnr_metric_forward(to1[:1], tl1[:1])
    assert abs(val - float(r1[0])) < 1e-3, (val, float(r1[0]))

    print("KERNEL_OK")
</pallas_src>

<mosaic_0001>
module attributes {stable_mosaic.version = 11 : i64} {
  func.func @_psnr_sse_kernel(%arg0: i32, %arg1: i32, %arg2: i32, %arg3: memref<1x8x128xf32, #tpu.memory_space<vmem>>, %arg4: memref<1x8x128xf32, #tpu.memory_space<vmem>>, %arg5: memref<1x1x1x1xf32, #tpu.memory_space<vmem>>, %arg6: memref<8x128xf32, #tpu.memory_space<vmem>>) attributes {dimension_semantics = [#tpu.dimension_semantics<parallel>, #tpu.dimension_semantics<parallel>, #tpu.dimension_semantics<arbitrary>], iteration_bounds = array<i64: 2, 1, 1>, scalar_prefetch = 0 : i64, scratch_operands = 1 : i64, tpu.core_type = #tpu.core_type<tc>, window_params = [{transform_indices = @transform_0, window_bounds = array<i64: 1, 8, 128>}, {transform_indices = @transform_1, window_bounds = array<i64: 1, 8, 128>}, {transform_indices = @transform_2, window_bounds = array<i64: 1, 1, 1, 1>}]} {
    %c0_i32 = arith.constant 0 : i32
    %0 = arith.cmpi eq, %arg2, %c0_i32 : i32
    %1 = arith.extui %0 : i1 to i32
    %c0_i32_0 = arith.constant 0 : i32
    %2 = arith.cmpi ne, %1, %c0_i32_0 : i32
    scf.if %2 {
      %cst_12 = arith.constant 0.000000e+00 : f32
      %17 = vector.broadcast %cst_12 : f32 to vector<8x128xf32>
      %c0_13 = arith.constant 0 : index
      %c0_14 = arith.constant 0 : index
      %18 = vector.load %arg6[%c0_13, %c0_14] : memref<8x128xf32, #tpu.memory_space<vmem>>, vector<8x128xf32>
      tpu.vector_store %arg6[%c0_13, %c0_14], %17 {strides = array<i32>} : memref<8x128xf32, #tpu.memory_space<vmem>>, vector<8x128xf32>,
    } else {
    }
    %c0 = arith.constant 0 : index
    %c0_1 = arith.constant 0 : index
    %c0_2 = arith.constant 0 : index
    %3 = vector.load %arg3[%c0, %c0_1, %c0_2] : memref<1x8x128xf32, #tpu.memory_space<vmem>>, vector<1x8x128xf32>
    %4 = vector.shape_cast %3 : vector<1x8x128xf32> to vector<8x128xf32>
    %c0_3 = arith.constant 0 : index
    %c0_4 = arith.constant 0 : index
    %c0_5 = arith.constant 0 : index
    %5 = vector.load %arg4[%c0_3, %c0_4, %c0_5] : memref<1x8x128xf32, #tpu.memory_space<vmem>>, vector<1x8x128xf32>
    %6 = vector.shape_cast %5 : vector<1x8x128xf32> to vector<8x128xf32>
    %7 = arith.subf %4, %6 : vector<8x128xf32>
    %8 = arith.mulf %7, %7 : vector<8x128xf32>
    %c0_6 = arith.constant 0 : index
    %c0_7 = arith.constant 0 : index
    %9 = vector.load %arg6[%c0_6, %c0_7] : memref<8x128xf32, #tpu.memory_space<vmem>>, vector<8x128xf32>
    %10 = vector.shape_cast %8 : vector<8x128xf32> to vector<1x8x128xf32>
    %cst = arith.constant dense<0.000000e+00> : vector<8x128xf32>
    %11 = vector.multi_reduction <add>, %10, %cst [0] : vector<1x8x128xf32> to vector<8x128xf32>
    %12 = arith.addf %9, %11 : vector<8x128xf32>
    %c0_8 = arith.constant 0 : index
    %c0_9 = arith.constant 0 : index
    %13 = vector.load %arg6[%c0_8, %c0_9] : memref<8x128xf32, #tpu.memory_space<vmem>>, vector<8x128xf32>
    tpu.vector_store %arg6[%c0_8, %c0_9], %12 {strides = array<i32>} : memref<8x128xf32, #tpu.memory_space<vmem>>, vector<8x128xf32>,
    %c0_i32_10 = arith.constant 0 : i32
    %14 = arith.cmpi eq, %arg2, %c0_i32_10 : i32
    %15 = arith.extui %14 : i1 to i32
    %c0_i32_11 = arith.constant 0 : i32
    %16 = arith.cmpi ne, %15, %c0_i32_11 : i32
    scf.if %16 {
      %c0_12 = arith.constant 0 : index
      %c0_13 = arith.constant 0 : index
      %17 = vector.load %arg6[%c0_12, %c0_13] : memref<8x128xf32, #tpu.memory_space<vmem>>, vector<8x128xf32>
      %cst_14 = arith.constant dense<0.000000e+00> : vector<128xf32>
      %18 = vector.multi_reduction <add>, %17, %cst_14 [0] : vector<8x128xf32> to vector<128xf32>
      %19 = vector.shape_cast %18 : vector<128xf32> to vector<1x128xf32>
      %cst_15 = arith.constant dense<0.000000e+00> : vector<1xf32>
      %20 = vector.multi_reduction <add>, %19, %cst_15 [1] : vector<1x128xf32> to vector<1xf32>
      %21 = vector.shape_cast %20 : vector<1xf32> to vector<1x1xf32>
      %c0_16 = arith.constant 0 : index
      %c0_17 = arith.constant 0 : index
      %c0_18 = arith.constant 0 : index
      %c0_19 = arith.constant 0 : index
      %22 = vector.load %arg5[%c0_16, %c0_17, %c0_18, %c0_19] : memref<1x1x1x1xf32, #tpu.memory_space<vmem>>, vector<1x1x1x1xf32>
      %23 = vector.shape_cast %22 : vector<1x1x1x1xf32> to vector<1x1xf32>
      %24 = vector.shape_cast %21 : vector<1x1xf32> to vector<1x1x1x1xf32>
      tpu.vector_store %arg5[%c0_16, %c0_17, %c0_18, %c0_19], %24 {strides = array<i32>} : memref<1x1x1x1xf32, #tpu.memory_space<vmem>>, vector<1x1x1x1xf32>,
    } else {
    }
    return
  }
  func.func @transform_0(%arg0: i32, %arg1: i32, %arg2: i32) -> (i32, i32, i32) {
    %c1_i32 = arith.constant 1 : i32
    %0 = arith.muli %arg1, %c1_i32 : i32
    %1 = arith.addi %0, %arg2 : i32
    %c0_i32 = arith.constant 0 : i32
    %2 = arith.minsi %1, %c0_i32 : i32
    %c0_i32_0 = arith.constant 0 : i32
    %c0_i32_1 = arith.constant 0 : i32
    return %arg0, %2, %c0_i32_0 : i32, i32, i32
  }
  func.func @transform_1(%arg0: i32, %arg1: i32, %arg2: i32) -> (i32, i32, i32) {
    %c1_i32 = arith.constant 1 : i32
    %0 = arith.muli %arg1, %c1_i32 : i32
    %1 = arith.addi %0, %arg2 : i32
    %c0_i32 = arith.constant 0 : i32
    %2 = arith.minsi %1, %c0_i32 : i32
    %c0_i32_0 = arith.constant 0 : i32
    %c0_i32_1 = arith.constant 0 : i32
    return %arg0, %2, %c0_i32_0 : i32, i32, i32
  }
  func.func @transform_2(%arg0: i32, %arg1: i32, %arg2: i32) -> (i32, i32, i32, i32) {
    %c0_i32 = arith.constant 0 : i32
    %c0_i32_0 = arith.constant 0 : i32
    %c0_i32_1 = arith.constant 0 : i32
    return %arg0, %arg1, %c0_i32, %c0_i32_0 : i32, i32, i32, i32
  }
}

</mosaic_0001>

<bundles_post_ra>
// kernel: tpu_custom_call.1
= control target key start
LH: loop header
LB: loop body
LE: loop exit
PB: predicated region body
PF: predicated region fallthrough
CT: control target
= control target key end

     0   :  { %7 = vsyncpa [#allocation4], 0  ;;  %s761_s0 = inlined_call_operand.hbm [shape: f32[2,8,128], index: 0, kind: input, shape index: {}]   ;;  %s762_s1 = inlined_call_operand.hbm [shape: f32[2,8,128], index: 1, kind: input, shape index: {}]   ;;  %s763_s2 = inlined_call_operand.vmem [shape: f32[2,1,1,1], index: 2, kind: output, shape index: {}]  }
   0x1   :  { %9 = vsyncpa [#allocation4 + $0x1], 0 }
   0x2   :  { %10 = vsyncpa [#allocation6], 0 }
   0x3   :  { %12 = vsyncpa [#allocation6 + $0x1], 0  ;;  %s589_s9 = smov 0   ;;  %s591_s10 = smov 0  }
   0x4   :  { %s593_s11 = smov 0   ;;  %s595_s12 = smov 0  }
   0x5   :  { %s597_s13 = smov 0   ;;  %s599_s14 = smov 0  }
   0x6 LB: > { %s383_s15 = sadd.s32 4294967295, %s570_s14   ;;  %s37_s16 = sadd.s32 1, %s566_s13  ;;  %s570_s14 = sphi %s599_s14, %s18_s14   ;;  %s566_s13 = sphi %s597_s13, %s777_s13   ;;  %s562_s12 = sphi %s595_s12, %s776_s12   ;;  %s558_s11 = sphi %s593_s11, %s775_s11   ;;  %s554_s10 = sphi %s591_s10, %s774_s10   ;;  %s550_s9 = sphi %s589_s9, %s773_s9  }
   0x7   : > { %p39_p0 = scmp.ge.s32.totalorder %s37_s16, 2  ;;  %s52_s17 = sadd.s32 1, %s558_s11 }
   0x8   : > { %p59_p1 = scmp.ne.s32.totalorder %s558_s11, %s554_s10  ;;  %p60_p2 = scmp.eq.s32.totalorder %s570_s14, 0 }
   0x9   : > { %s779_s16 = smov (%p39_p0, %s37_s16), 0  ;;  %p65_p4 = scmp.ne.s32.totalorder %s554_s10, %s550_s9 }
   0xa   : > { %p625_p3 = por %p60_p2, %p59_p1  ;;  %s47_s19 = ssub.s32 %s566_s13, %s779_s16 }
   0xb   : > { %p66_p5 = scmp.eq.s32.totalorder %s383_s15, 0  ;;  %p50_p6 = scmp.eq.s32.totalorder %s47_s19, 0 }
   0xc   : > { %p407_p8 = scmp.lt.s32.totalorder %s570_s14, 2  ;;  %s641_s22 = sand.u32 1, %s558_s11  }
   0xd   : > { %p632_p7 = por %p66_p5, %p65_p4  ;;  %s388_s23 = sshll.u32 %s566_s13, 7 }
   0xe   : > { %s638_s21 = scalar_select %p50_p6, %s558_s11, %s52_s17  }
   0xf   : > { %s766_s20 = scalar_select %p632_p7, 1, 0 }
  0x10   : > { %s387_s24 = sshll.u32 %s641_s22, 3  ;;  %s650_s27 = scalar_lea.hbm %s761_s0, %s388_s23 }
  0x11   : > { %s155_s28 = scalar_lea.vmem [#allocation3], %s387_s24  ;;  %p656_p9 = pnand %p407_p8, %p625_p3 }
  0x12   : > { %s166_s29 = sshll.u32 %s155_s28, 4  ;;  %s152_s3 = scalar_lea.sflag [#allocation4], %s641_s22  ;;  %s660_s29 = int_to_ptr.vmem [resolvable:$true] %s166_s29 }
  0x13   : > { %s456_s4 = scalar_lea.hbm %s650_s27, 128  ;;  %p458_p13 = pneg %p656_p9 }
  0x14   : > { %p457_p12 = scmp.ne.s32.totalorder %s650_s27, %s456_s4  ;;  %s461_s7 = scalar_lea.hbm %s761_s0, 256 }
  0x15   : > { %p462_p2 = scmp.lt.u32.totalorder %s650_s27, %s761_s0  ;;  %p463_p3 = scmp.lt.u32.totalorder %s461_s7, %s456_s4 }
  0x16   : > { %p459_p0 = pnand %p458_p13, %p457_p12  ;;  %p465_p5 = scmp.lt.u32.totalorder %s456_s4, %s650_s27 }
  0x17   : > { %p464_p4 = por %p463_p3, %p462_p2 }
  0x18   : > { %p460_p1 = pneg %p459_p0 }
  0x19   : > { %p466_p6 = por %p465_p5, %p464_p4 }
  0x1b   : > { %p467_p8 = pnand %p466_p6, %p460_p1 }
  0x1d   : > { %470 = shalt.err (!%p467_p8)
}
  0x1e   : > { %s471_s15 = scalar_lea.vmem %s660_s29, 128  ;;  %s572_s17 = smov [#allocation3]  }
  0x1f   : > { %p472_p12 = scmp.ne.s32.totalorder %s660_s29, %s471_s15  ;;  %s476_s18 = sshll.u32 %s572_s17, 4  ;;  %s477_s18 = int_to_ptr.vmem [resolvable:$false] %s476_s18 }
  0x20   : > { %s478_s19 = scalar_lea.vmem %s477_s18, 256  ;;  %p479_p11 = scmp.lt.s32.totalorder %s660_s29, %s477_s18 }
  0x21   : > { %p474_p0 = pnand %p472_p12, %p458_p13  ;;  %p480_p2 = scmp.lt.s32.totalorder %s478_s19, %s471_s15 }
  0x23   : > { %p475_p10 = pneg %p474_p0  ;;  %p481_p3 = por %p480_p2, %p479_p11 }
  0x25   : > { %p482_p4 = pnand %p481_p3, %p475_p10 }
  0x27   : > { %485 = shalt.err (!%p482_p4)
}
  0x28   : > { %403 = dma.hbm_to_vmem [thread:$0]  (!%p656_p9), %s650_s27, 128, %s660_s29, %s152_s3  }
  0x29   : > { %p768_p1 = scmp.lt.s32.totalorder %s570_s14, 3  ;;  %p769_p5 = scmp.ge.s32.totalorder %s570_s14, 1 }
  0x2a   : > { %s703_s4 = scalar_lea.hbm %s762_s1, %s388_s23  ;;  %s177_s5 = scalar_lea.vmem [#allocation5], %s387_s24 }
  0x2b   : > { %p694_p6 = pnand %p769_p5, %p768_p1  ;;  %s188_s6 = sshll.u32 %s177_s5, 4  ;;  %s189_s6 = int_to_ptr.vmem [resolvable:$true] %s188_s6 }
  0x2c   : > { %s174_s27 = scalar_lea.sflag [#allocation6], %s641_s22  ;;  %s486_s29 = scalar_lea.hbm %s703_s4, 128 }
  0x2d   : > { %s770_s25 = scalar_select %p694_p6, 1, 0 }
  0x2e   : > { %p487_p10 = scmp.ne.s32.totalorder %s703_s4, %s486_s29  ;;  %s491_s23 = scalar_lea.hbm %s762_s1, 256 }
  0x2f   : > { %p492_p12 = scmp.lt.u32.totalorder %s703_s4, %s762_s1  ;;  %p493_p0 = scmp.lt.u32.totalorder %s491_s23, %s486_s29 }
  0x30   : > { %p489_p11 = pnand %p487_p10, %p458_p13  ;;  %p495_p3 = scmp.lt.u32.totalorder %s486_s29, %s703_s4 }
  0x31   : > { %p494_p2 = por %p493_p0, %p492_p12 }
  0x32   : > { %p490_p8 = pneg %p489_p11 }
  0x33   : > { %p496_p4 = por %p495_p3, %p494_p2 }
  0x35   : > { %p497_p1 = pnand %p496_p4, %p490_p8 }
  0x37   : > { %500 = shalt.err (!%p497_p1)
}
  0x38   : > { %s501_s22 = scalar_lea.vmem %s189_s6, 128  ;;  %s573_s24 = smov [#allocation5]  }
  0x39   : > { %p502_p5 = scmp.ne.s32.totalorder %s189_s6, %s501_s22  ;;  %s506_s15 = sshll.u32 %s573_s24, 4  ;;  %s507_s15 = int_to_ptr.vmem [resolvable:$false] %s506_s15 }
  0x3a   : > { %s508_s17 = scalar_lea.vmem %s507_s15, 256  ;;  %p509_p7 = scmp.lt.s32.totalorder %s189_s6, %s507_s15 }
  0x3b   : > { %p504_p10 = pnand %p502_p5, %p458_p13  ;;  %p510_p6 = scmp.lt.s32.totalorder %s508_s17, %s501_s22 }
  0x3d   : > { %p505_p11 = pneg %p504_p10  ;;  %p511_p0 = por %p510_p6, %p509_p7 }
  0x3f   : > { %p512_p12 = pnand %p511_p0, %p505_p11 }
  0x41   : > { %515 = shalt.err (!%p512_p12)
}
  0x42   : > { %406 = dma.hbm_to_vmem [thread:$0]  (!%p656_p9), %s703_s4, 128, %s189_s6, %s174_s27  }
  0x43   : > { %p771_p8 = scmp.ne.s32.totalorder %s770_s25, 0 }
  0x44   : > { %s199_s18 = sand.u32 (!%p771_p8), 1, %s554_s10   ;;  %p772_p13 = scmp.ne.s32.totalorder (!%p771_p8), %s766_s20, 0 }
  0x45   : > { %197 = sbr.rel (%p771_p8) target bundleno = 239 (0xef), region = 28  ;;  %s392_s19 = sshll.u32 (!%p771_p8), %s199_s18, 3 }
  0x46   : > { %s200_s26 = scalar_lea.sflag (!%p771_p8), [#allocation4], %s199_s18  ;;  %s203_s28 = scalar_lea.vmem (!%p771_p8), [#allocation3], %s392_s19 }
  0x4c   : > { %541 = dma.done.wait (%p772_p13), %s200_s26, 128  }
  0x4d   : > { %543 = vsyncadd (%p772_p13), %s200_s26, 4294967168  ;;  %s209_s5 = scalar_lea.sflag [#allocation6], %s199_s18  ;;  %s212_s29 = scalar_lea.vmem [#allocation5], %s392_s19 }
  0x4e   : > { %545 = dma.done.wait (%p772_p13), %s209_s5, 128  }
  0x4f   : > { %547 = vsyncadd (%p772_p13), %s209_s5, 4294967168  ;;  %v256_v0 = vld [vmem:[%s203_s28] sm:$0xff]  ;;  %v257_v1 = vld [vmem:[%s212_s29] sm:$0xff]  ;;  %p245_p7 = scmp.lt.s32.totalorder %s562_s12, 1  ;;  %vm276_vm0 = vcmask 0  }
  0x50   : > { %v258_v2 = vsub.f32 %v256_v0, %v257_v1 }
  0x51   : > { %s781_s12 = smov (!%p245_p7, %s562_s12), 1 }
  0x52   : > { %v259_v3 = vmul.f32 %v258_v2, %v258_v2  ;;  %s250_s20 = scalar_lea.vmem %s763_s2, %s781_s12 }
  0x54   : > { %v268_v4 = vrot.slane %v259_v3, 4 }
  0x56   : > { %v269_v5 = vadd.f32 %v268_v4, %v259_v3 }
  0x58   : > { %v270_v6 = vrot.slane %v269_v5, 2 }
  0x5a   : > { %v271_v7 = vadd.f32 %v270_v6, %v269_v5 }
  0x5c   : > { %v272_v8 = vrot.slane %v271_v7, 1 }
  0x5e   : > { %v273_v9 = vadd.f32 %v272_v8, %v271_v7 }
  0x60   : > { %274 = vadd.xlane.f32.xlu0 %v273_v9 }
  0xed   : > { %v275_v10 = vpop.xlane.xlu0 %274 }
  0xee   : > { %277 = vst.msk [vmem:[%s250_s20] sm:$0x1] %vm276_vm0, %v275_v10 }
  0xef PF: > { %s18_s14 = sadd.s32 1, %s570_s14   ;;  %s773_s9 = smov %s554_s10 }
  0xf0   : > { %p15_p9 = scmp.ge.s32.totalorder %s18_s14, 4   ;;  %s774_s10 = smov %s558_s11 }
  0xf1   : > { %s775_s11 = smov %s638_s21  ;;  %s776_s12 = smov %s566_s13 }
  0xf2   : > { %s777_s13 = smov %s779_s16  ;;  %17 = sbr.rel (!%p15_p9) target bundleno = 6 (0x6), region = 89 }
  0xf9   :  { %301 = vsyncpa [#allocation4], 1 }
  0xfa   :  { %303 = vsyncpa [#allocation4 + $0x1], 1 }
  0xfb   :  { %304 = vsyncpa [#allocation6], 1 }
  0xfc   :  { %306 = vsyncpa [#allocation6 + $0x1], 1 }

</bundles_post_ra>
